<compile_context>
chip_gen: v7x
topology: tpu7x:2x2x1
jax: 0.10.0
libtpu: 0.0.40
codegen_flags: <defaults>
</compile_context>

<pallas_src>
import functools

import jax
import jax.numpy as jnp
from jax.experimental import pallas as pl
from jax.experimental.pallas import tpu as pltpu

_LANES = 128


def _round_up(x, m):
    return ((x + m - 1) // m) * m


def _tile_config(batch, feature, itemsize, batch_tile=None):
    """Pick the batch tile TB (multiple of 128) and a matching scoped-VMEM limit.

    VMEM accounting: the (TB, F) feature block is lane-padded to
    round_up(F, 128) in VMEM, double-buffered by the pipeline, and the
    in-kernel f32 cast / product / broadcast / transpose intermediates cost
    ~4 more f32 copies of the padded tile.
    """
    f_pad = _round_up(max(feature, 1), _LANES)
    # bytes of VMEM per batch row: 2 pipeline buffers (native dtype) + ~4 f32
    # intermediates, all lane-padded.
    per_row = 2 * f_pad * itemsize + 4 * f_pad * 4
    try:
        vmem_cap = pltpu.get_tpu_info().vmem_capacity_bytes
    except Exception:  # pragma: no cover - conservative fallback
        vmem_cap = 128 * 1024 * 1024

    if batch_tile is None:
        # Use ~1/2 of physical VMEM for the pipeline working set:
        #   v5e/v6e (128 MiB) -> ~64 MiB -> TB ~ 21k rows (~2.7 MiB HBM/step)
        #   v7x     (64 MiB)  -> ~32 MiB -> TB ~ 11k rows  (~1.3 MiB HBM/step)
        target = vmem_cap // 2
        tb = max(_LANES, (target // per_row) // _LANES * _LANES)
    else:
        tb = max(_LANES, _round_up(batch_tile, _LANES))

    # Never use a tile (much) larger than the batch itself.
    tb = min(tb, _round_up(batch, _LANES))

    limit = tb * per_row + (8 << 20)          # slack for outputs/labels/weight
    limit = max(32 << 20, min(limit, int(0.75 * vmem_cap)))
    return tb, limit


def _prob_row(x_ref, w_ref, b_ref, tb):
    """Lane-dense (1, TB) row of sigmoid(x @ W.T + b) for the current tile."""
    x = x_ref[...].astype(jnp.float32)                    # (TB, F)
    w = w_ref[...].astype(jnp.float32)                    # (1, F) lane-dense
    # N=1 GEMV: VPU multiply + lane (XLU) reduction; MXU would be ~500x padded.
    col = jnp.sum(x * w, axis=-1, keepdims=True)          # (TB, 1) logits - b
    # Column -> lane-dense row.  A (TB,1)->(1,TB) reshape is not a layout
    # no-op on TPU, so route through a fully (8,128)-aligned 32-bit XLU
    # transpose of the lane-broadcast column (XLU slot is otherwise idle).
    mat = jnp.broadcast_to(col, (tb, _LANES))              # (TB, 128)
    row = jnp.transpose(mat, (1, 0))[0:1, :]               # (1, TB)
    return jax.nn.sigmoid(row + b_ref[0])                  # (1, TB)


def _head_kernel(x_ref, w_ref, b_ref, prob_ref, *, tb):
    prob_ref[...] = _prob_row(x_ref, w_ref, b_ref, tb)


def _head_loss_kernel(x_ref, w_ref, b_ref, y_ref, prob_ref, part_ref, *,
                      tb, batch, ragged):
    """Per-tile prob + lane-dense partial BCE sum (finalized in the wrapper)."""
    prob = _prob_row(x_ref, w_ref, b_ref, tb)               # (1, TB)
    prob_ref[...] = prob

    y = y_ref[...].astype(jnp.float32)                      # (1, TB) in-kernel cast
    # torch.nn.BCELoss clamps each log term at -100.
    log_p = jnp.maximum(jnp.log(prob), -100.0)
    log_1mp = jnp.maximum(jnp.log(1.0 - prob), -100.0)
    terms = y * log_p + (1.0 - y) * log_1mp                 # (1, TB)

    if ragged:
        # Only emitted when B % TB != 0: mask the padded lanes of the final
        # tile so garbage rows never reach the mean.
        lane = jax.lax.broadcasted_iota(jnp.int32, terms.shape, 1)
        valid = (pl.program_id(0) * tb + lane) < batch
        terms = jnp.where(valid, terms, 0.0)

    part_ref[...] = jnp.broadcast_to(
        jnp.sum(terms, axis=-1, keepdims=True), (1, _LANES))


def classification_head(features, weight, bias, labels=None, *,
                        batch_tile=None):
    """
    features: (B, F) any float dtype (cast to f32 inside the kernel)
    weight:   (1, F)  -- same layout as torch nn.Linear(feature_size, 1).weight
    bias:     (1,)
    labels:   optional (B,) float/int/bool
    Returns prob (B, 1), or (scalar loss, prob) if labels are given.
    """
    B, F = features.shape
    tb, vmem_limit = _tile_config(B, F, features.dtype.itemsize, batch_tile)
    nt = pl.cdiv(B, tb)
    b_pad = nt * tb
    bias_s = bias.reshape(1).astype(jnp.float32)            # scalar -> SMEM

    x_spec = pl.BlockSpec((tb, F), lambda i: (i, 0))
    w_spec = pl.BlockSpec((1, F), lambda i: (0, 0))          # resident weight row
    b_spec = pl.BlockSpec(memory_space=pltpu.MemorySpace.SMEM)
    prob_spec = pl.BlockSpec((1, tb), lambda i: (0, i))       # lane-dense blocks

    cparams = pltpu.CompilerParams(
        dimension_semantics=("parallel",),                    # both branches now
        vmem_limit_bytes=vmem_limit)

    feat_bytes = features.size * features.dtype.itemsize
    w_bytes = weight.size * weight.dtype.itemsize

    # NOTE: nn.Dropout is identity at inference time -> no-op here.
    if labels is None:
        cost = pl.CostEstimate(flops=2 * B * F + 4 * B,
                               transcendentals=B,
                               bytes_accessed=feat_bytes + w_bytes + B * 4)
        prob_row = pl.pallas_call(
            functools.partial(_head_kernel, tb=tb),
            out_shape=jax.ShapeDtypeStruct((1, b_pad), jnp.float32),
            grid=(nt,),
            in_specs=[x_spec, w_spec, b_spec],
            out_specs=prob_spec,
            compiler_params=cparams,
            cost_estimate=cost,
        )(features, weight, bias_s)
        return prob_row.reshape(-1)[:B].reshape(B, 1)

    y_row = labels.reshape(1, B)                              # native dtype, free view
    y_spec = pl.BlockSpec((1, tb), lambda i: (0, i))
    part_spec = pl.BlockSpec((1, _LANES), lambda i: (0, i))    # per-tile partial sums

    cost = pl.CostEstimate(
        flops=2 * B * F + 10 * B,
        transcendentals=3 * B,                                 # sigmoid + 2 logs / row
        bytes_accessed=feat_bytes + w_bytes
                       + labels.size * labels.dtype.itemsize + B * 4)

    prob_row, partials = pl.pallas_call(
        functools.partial(_head_loss_kernel, tb=tb, batch=B,
                          ragged=(B % tb) != 0),
        out_shape=(
            jax.ShapeDtypeStruct((1, b_pad), jnp.float32),
            jax.ShapeDtypeStruct((1, nt * _LANES), jnp.float32),
        ),
        grid=(nt,),
        in_specs=[x_spec, w_spec, b_spec, y_spec],
        out_specs=(prob_spec, part_spec),
        compiler_params=cparams,
        cost_estimate=cost,
    )(features, weight, bias_s, y_row)

    prob = prob_row.reshape(-1)[:B].reshape(B, 1)
    loss = -jnp.sum(partials.reshape(nt, _LANES)[:, 0]) / B   # finalize in wrapper
    return loss, prob


if __name__ == "__main__":
    key = jax.random.PRNGKey(0)
    k_feat, k_w, k_b, k_lab = jax.random.split(key, 4)

    B, FEATURE_SIZE = 8, 32

    features = jax.random.normal(k_feat, (B, FEATURE_SIZE), dtype=jnp.float32)
    weight = jax.random.normal(k_w, (1, FEATURE_SIZE), dtype=jnp.float32) * 0.1
    bias = jax.random.normal(k_b, (1,), dtype=jnp.float32) * 0.1
    labels = (jax.random.uniform(k_lab, (B,)) > 0.5).astype(jnp.float32)

    # no-labels branch
    prob = jax.block_until_ready(classification_head(features, weight, bias))

    # labels branch (loss, prob)
    loss, prob2 = classification_head(features, weight, bias, labels=labels)
    loss, prob2 = jax.block_until_ready((loss, prob2))

    # reference
    ref_prob = jax.nn.sigmoid(features @ weight.T + bias)
    ref_loss = -jnp.mean(
        labels[:, None] * jnp.log(ref_prob)
        + (1.0 - labels[:, None]) * jnp.log(1.0 - ref_prob)
    )
    assert jnp.allclose(prob, ref_prob, atol=1e-5)
    assert jnp.allclose(prob2, ref_prob, atol=1e-5)
    assert jnp.allclose(loss, ref_loss, atol=1e-5)

    # Multi-tile path with a ragged final tile (B=300, TB=128 -> grid of 3).
    B2 = 300
    feat2 = jax.random.normal(k_feat, (B2, FEATURE_SIZE), dtype=jnp.float32)
    lab2 = (jax.random.uniform(k_lab, (B2,)) > 0.5).astype(jnp.float32)
    loss2, prob3 = classification_head(feat2, weight, bias, labels=lab2,
                                       batch_tile=128)
    loss2, prob3 = jax.block_until_ready((loss2, prob3))

    ref_prob2 = jax.nn.sigmoid(feat2 @ weight.T + bias)
    ref_loss2 = -jnp.mean(
        lab2[:, None] * jnp.log(ref_prob2)
        + (1.0 - lab2[:, None]) * jnp.log(1.0 - ref_prob2)
    )
    assert jnp.allclose(prob3, ref_prob2, atol=1e-5)
    assert jnp.allclose(loss2, ref_loss2, atol=1e-5)

    print("KERNEL_OK")
</pallas_src>

<mosaic_0001>
module attributes {stable_mosaic.version = 11 : i64} {
  func.func @_head_kernel(%arg0: i32, %arg1: memref<128x32xf32, #tpu.memory_space<vmem>>, %arg2: memref<1x32xf32, #tpu.memory_space<vmem>>, %arg3: memref<1xf32, #tpu.memory_space<smem>>, %arg4: memref<1x128xf32, #tpu.memory_space<vmem>>) attributes {dimension_semantics = [#tpu.dimension_semantics<parallel>], iteration_bounds = array<i64: 1>, scalar_prefetch = 0 : i64, scratch_operands = 0 : i64, tpu.core_type = #tpu.core_type<tc>, window_params = [{transform_indices = @transform_0, window_bounds = array<i64: 128, 32>}, {pipeline_mode = #tpu.pipeline_mode<synchronous>, transform_indices = @transform_1, window_bounds = array<i64: 1, 32>}, {transform_indices = @transform_2, window_bounds = array<i64: 1>}, {transform_indices = @transform_3, window_bounds = array<i64: 1, 128>}]} {
    %c0 = arith.constant 0 : index
    %c0_0 = arith.constant 0 : index
    %0 = vector.load %arg1[%c0, %c0_0] : memref<128x32xf32, #tpu.memory_space<vmem>>, vector<128x32xf32>
    %c0_1 = arith.constant 0 : index
    %c0_2 = arith.constant 0 : index
    %1 = vector.load %arg2[%c0_1, %c0_2] : memref<1x32xf32, #tpu.memory_space<vmem>>, vector<1x32xf32>
    %2 = vector.broadcast %1 : vector<1x32xf32> to vector<128x32xf32>
    %3 = arith.mulf %0, %2 : vector<128x32xf32>
    %cst = arith.constant dense<0.000000e+00> : vector<128xf32>
    %4 = vector.multi_reduction <add>, %3, %cst [1] : vector<128x32xf32> to vector<128xf32>
    %5 = vector.shape_cast %4 : vector<128xf32> to vector<128x1xf32>
    %6 = vector.shape_cast %5 : vector<128x1xf32> to vector<128x1xf32>
    %7 = vector.broadcast %6 : vector<128x1xf32> to vector<128x128xf32>
    %8 = tpu.transpose %7, [1, 0] : vector<128x128xf32> -> vector<128x128xf32>
    %9 = vector.extract_strided_slice %8 {offsets = [0, 0], sizes = [1, 128], strides = [1, 1]} : vector<128x128xf32> to vector<1x128xf32>
    %c0_3 = arith.constant 0 : index
    %10 = memref.load %arg3[%c0_3] : memref<1xf32, #tpu.memory_space<smem>>
    %11 = vector.broadcast %10 : f32 to vector<1x128xf32>
    %12 = arith.addf %9, %11 : vector<1x128xf32>
    %13 = arith.negf %12 : vector<1x128xf32>
    %14 = math.exp %13 : vector<1x128xf32>
    %cst_4 = arith.constant 1.000000e+00 : f32
    %15 = vector.broadcast %cst_4 : f32 to vector<1x128xf32>
    %16 = arith.addf %15, %14 : vector<1x128xf32>
    %17 = arith.divf %15, %16 : vector<1x128xf32>
    %c0_5 = arith.constant 0 : index
    %c0_6 = arith.constant 0 : index
    %18 = vector.load %arg4[%c0_5, %c0_6] : memref<1x128xf32, #tpu.memory_space<vmem>>, vector<1x128xf32>
    tpu.vector_store %arg4[%c0_5, %c0_6], %17 {strides = array<i32>} : memref<1x128xf32, #tpu.memory_space<vmem>>, vector<1x128xf32>,
    return
  }
  func.func @transform_0(%arg0: i32) -> (i32, i32) {
    %c0_i32 = arith.constant 0 : i32
    %c0_i32_0 = arith.constant 0 : i32
    return %arg0, %c0_i32 : i32, i32
  }
  func.func @transform_1(%arg0: i32) -> (i32, i32) {
    %c0_i32 = arith.constant 0 : i32
    %c0_i32_0 = arith.constant 0 : i32
    %c0_i32_1 = arith.constant 0 : i32
    return %c0_i32, %c0_i32_0 : i32, i32
  }
  func.func @transform_2(%arg0: i32) -> i32 {
    %c0_i32 = arith.constant 0 : i32
    %c0_i32_0 = arith.constant 0 : i32
    return %c0_i32 : i32
  }
  func.func @transform_3(%arg0: i32) -> (i32, i32) {
    %c0_i32 = arith.constant 0 : i32
    %c0_i32_0 = arith.constant 0 : i32
    return %c0_i32, %arg0 : i32, i32
  }
}

</mosaic_0001>

<bundles_post_ra>
// kernel: tpu_custom_call.1
= control target key start
LH: loop header
LB: loop body
LE: loop exit
PB: predicated region body
PF: predicated region fallthrough
CT: control target
= control target key end

     0   :  { %9 = vsyncpa [#allocation4], 0  ;;  %s303_s0 = inlined_call_operand.hbm [shape: f32[8,32], index: 0, kind: input, shape index: {}]   ;;  %s304_s1 = inlined_call_operand.vmem [shape: f32[1,32], index: 1, kind: input, shape index: {}]   ;;  %s305_s2 = inlined_call_operand.<no memory space> [shape: f32[1], index: 2, kind: input, shape index: {}]   ;;  %s306_s3 = inlined_call_operand.hbm [shape: f32[1,128], index: 3, kind: output, shape index: {}]  }
   0x1   :  { %10 = vsyncpa [#allocation5], 0 }
   0x2   :  { %15 = vsyncadd [#allocation4], 1920  ;;  %s233_s12 = smov [#allocation3]   ;;  %s185_s16 = scalar_lea.hbm %s303_s0, 128 }
   0x3   :  { %s16_s13 = sshll.u32 %s233_s12, 4  ;;  %p186_p0 = scmp.ne.s32.totalorder %s303_s0, %s185_s16  ;;  %s17_s13 = int_to_ptr.vmem [resolvable:$true] %s16_s13 }
   0x4   :  { %p189_p1 = scmp.lt.u32.totalorder %s185_s16, %s303_s0 }
   0x6   :  { %p191_p2 = pnand %p189_p1, %p186_p0 }
   0x8   :  { %194 = shalt.err (!%p191_p2)
}
   0x9   :  { %s195_s21 = scalar_lea.vmem %s17_s13, 128  ;;  %s199_s22 = scalar_lea.vmem %s17_s13, 2048 }
   0xa   :  { %p196_p3 = scmp.ne.s32.totalorder %s17_s13, %s195_s21  ;;  %p200_p4 = scmp.lt.s32.totalorder %s17_s13, %s17_s13 }
   0xb   :  { %p201_p5 = scmp.lt.s32.totalorder %s199_s22, %s195_s21 }
   0xd   :  { %p202_p6 = por %p201_p5, %p200_p4 }
   0xf   :  { %p203_p7 = pnand %p202_p6, %p196_p3 }
  0x11   :  { %206 = shalt.err (!%p203_p7)
}
  0x12   :  { %s234_s23 = smov 128   ;;  %s235_s24 = smov 8  }
  0x13   :  { %22 = dma.hbm_to_vmem [thread:$0]  %s303_s0, 128, %s17_s13, [#allocation4], %s234_s23, %s234_s23, %s235_s24  }
  0x14   :  { %229 = dma.done.wait [#allocation4], 2048  }
  0x15   :  { %230 = vsyncadd [#allocation4], 4294965248  ;;  %v30_v0 = vld [vmem:[#allocation3] sm:$0xff]  ;;  %vm69_vm0 = vcmask 261120   ;;  %v31_v2 = vld [vmem:[#allocation3 + $0x8] sm:$0xff]  ;;  %s236_s29 = smov [#allocation6]  }
  0x16   :  { %v175_v1 = vld [vmem:[%s304_s1] ss:$0 sm:$0xff]  ;;  %v32_v5 = vld [vmem:[#allocation3 + $0x10] sm:$0xff]  ;;  %v33_v6 = vld [vmem:[#allocation3 + $0x18] sm:$0xff]  ;;  %s166_s30 = sshll.u32 %s236_s29, 4  ;;  %s167_s30 = int_to_ptr.vmem [resolvable:$true] %s166_s30 }
  0x17   :  { %v53_v3 = vmul.f32 %v175_v1, %v30_v0  ;;  %v54_v4 = vmul.f32 %v175_v1, %v31_v2  ;;  %v55_v7 = vmul.f32 %v175_v1, %v32_v5  ;;  %v56_v8 = vmul.f32 %v175_v1, %v33_v6  ;;  %v34_v9 = vld [vmem:[#allocation3 + $0x20] sm:$0xff]  ;;  %v35_v11 = vld [vmem:[#allocation3 + $0x28] sm:$0xff]  ;;  %v36_v17 = vld [vmem:[#allocation3 + $0x30] sm:$0xff]  ;;  %s207_s4 = scalar_lea.vmem %s167_s30, 16  ;;  %s211_s5 = scalar_lea.vmem %s167_s30, 32 }
  0x18   :  { %v57_v14 = vmul.f32 %v175_v1, %v34_v9  ;;  %v58_v16 = vmul.f32 %v175_v1, %v35_v11  ;;  %v37_v18 = vld [vmem:[#allocation3 + $0x38] sm:$0xff]  ;;  %v59_v20 = vmul.f32 %v175_v1, %v36_v17  ;;  %v38_v23 = vld [vmem:[#allocation3 + $0x40] sm:$0xff]  ;;  %v39_v24 = vld [vmem:[#allocation3 + $0x48] sm:$0xff]  ;;  %p208_p8 = scmp.ne.s32.totalorder %s167_s30, %s207_s4  ;;  %p212_p9 = scmp.lt.s32.totalorder %s167_s30, %s167_s30 }
  0x19   :  { %v70_v10 = vsel %vm69_vm0, %v53_v3, 0.0  ;;  %v76_v12 = vsel %vm69_vm0, %v55_v7, 0.0  ;;  %v73_v13 = vsel %vm69_vm0, %v54_v4, 0.0  ;;  %v79_v15 = vsel %vm69_vm0, %v56_v8, 0.0  ;;  %v40_v29 = vld [vmem:[#allocation3 + $0x50] sm:$0xff]  ;;  %v41_v30 = vld [vmem:[#allocation3 + $0x58] sm:$0xff]  ;;  %p213_p10 = scmp.lt.s32.totalorder %s211_s5, %s207_s4 }
  0x1a   :  { %71 = vadd.xlane.f32.xlu0 %v70_v10  ;;  %77 = vadd.xlane.f32.xlu1 %v76_v12  ;;  %v82_v19 = vsel %vm69_vm0, %v57_v14, 0.0  ;;  %v85_v21 = vsel %vm69_vm0, %v58_v16, 0.0  ;;  %v60_v22 = vmul.f32 %v175_v1, %v37_v18  ;;  %v88_v25 = vsel %vm69_vm0, %v59_v20, 0.0  ;;  %v42_v35 = vld [vmem:[#allocation3 + $0x60] sm:$0xff]  ;;  %v43_v36 = vld [vmem:[#allocation3 + $0x68] sm:$0xff]  ;;  %v44_v41 = vld [vmem:[#allocation3 + $0x70] sm:$0xff] }
  0x1b   :  { %v61_v26 = vmul.f32 %v175_v1, %v38_v23  ;;  %v62_v28 = vmul.f32 %v175_v1, %v39_v24  ;;  %v63_v32 = vmul.f32 %v175_v1, %v40_v29  ;;  %v64_v34 = vmul.f32 %v175_v1, %v41_v30  ;;  %v45_v42 = vld [vmem:[#allocation3 + $0x78] sm:$0xff]  ;;  %p214_p11 = por %p213_p10, %p212_p9 }
  0x1c   :  { %v91_v27 = vsel %vm69_vm0, %v60_v22, 0.0  ;;  %v65_v38 = vmul.f32 %v175_v1, %v42_v35  ;;  %v66_v40 = vmul.f32 %v175_v1, %v43_v36  ;;  %v67_v44 = vmul.f32 %v175_v1, %v44_v41 }
  0x1d   :  { %v94_v31 = vsel %vm69_vm0, %v61_v26, 0.0  ;;  %v97_v33 = vsel %vm69_vm0, %v62_v28, 0.0  ;;  %v100_v37 = vsel %vm69_vm0, %v63_v32, 0.0  ;;  %v103_v39 = vsel %vm69_vm0, %v64_v34, 0.0  ;;  %p215_p12 = pnand %p214_p11, %p208_p8 }
  0x1e   :  { %74 = vadd.xlane.f32.xlu0 %v73_v13  ;;  %80 = vadd.xlane.f32.xlu1 %v79_v15  ;;  %v106_v43 = vsel %vm69_vm0, %v65_v38, 0.0  ;;  %v109_v45 = vsel %vm69_vm0, %v66_v40, 0.0  ;;  %v68_v46 = vmul.f32 %v175_v1, %v45_v42  ;;  %v112_v47 = vsel %vm69_vm0, %v67_v44, 0.0 }
  0x1f   :  { %v151_v1 = vstv %s305_s2 }
  0x20   :  { %v115_v48 = vsel %vm69_vm0, %v68_v46, 0.0 }
  0x22   :  { %83 = vadd.xlane.f32.xlu0 %v82_v19  ;;  %86 = vadd.xlane.f32.xlu1 %v85_v21 }
  0x26   :  { %89 = vadd.xlane.f32.xlu0 %v88_v25  ;;  %92 = vadd.xlane.f32.xlu1 %v91_v27 }
  0x2a   :  { %95 = vadd.xlane.f32.xlu0 %v94_v31  ;;  %98 = vadd.xlane.f32.xlu1 %v97_v33 }
  0x2e   :  { %101 = vadd.xlane.f32.xlu0 %v100_v37  ;;  %104 = vadd.xlane.f32.xlu1 %v103_v39 }
  0x32   :  { %107 = vadd.xlane.f32.xlu0 %v106_v43  ;;  %110 = vadd.xlane.f32.xlu1 %v109_v45 }
  0x36   :  { %113 = vadd.xlane.f32.xlu0 %v112_v47  ;;  %116 = vadd.xlane.f32.xlu1 %v115_v48 }
  0xa7   :  { %v72_v49 = vpop.xlane.xlu0 %71  ;;  %v78_v51 = vpop.xlane.xlu1 %77 }
  0xa8   :  { %118 = vxpose.xlu0.b32.start [1/16] (narrow) %v72_v49, 8 }
  0xab   :  { %v75_v50 = vpop.xlane.xlu0 %74  ;;  %v81_v52 = vpop.xlane.xlu1 %80 }
  0xac   :  { %119 = vxpose.xlu0.b32.cont [2/16] (narrow) %v75_v50, 8 }
  0xaf   :  { %v84_v53 = vpop.xlane.xlu0 %83  ;;  %v87_v54 = vpop.xlane.xlu1 %86 }
  0xb0   :  { %120 = vxpose.xlu0.b32.cont [3/16] (narrow) %v78_v51, 8 }
  0xb3   :  { %v90_v55 = vpop.xlane.xlu0 %89  ;;  %v93_v56 = vpop.xlane.xlu1 %92 }
  0xb4   :  { %121 = vxpose.xlu0.b32.cont [4/16] (narrow) %v81_v52, 8 }
  0xb7   :  { %v96_v57 = vpop.xlane.xlu0 %95  ;;  %v99_v58 = vpop.xlane.xlu1 %98 }
  0xb8   :  { %122 = vxpose.xlu0.b32.cont [5/16] (narrow) %v84_v53, 8 }
  0xbb   :  { %v102_v59 = vpop.xlane.xlu0 %101  ;;  %v105_v60 = vpop.xlane.xlu1 %104 }
  0xbc   :  { %123 = vxpose.xlu0.b32.cont [6/16] (narrow) %v87_v54, 8 }
  0xbf   :  { %v108_v61 = vpop.xlane.xlu0 %107  ;;  %v111_v62 = vpop.xlane.xlu1 %110 }
  0xc0   :  { %124 = vxpose.xlu0.b32.cont [7/16] (narrow) %v90_v55, 8 }
  0xc3   :  { %v114_v63 = vpop.xlane.xlu0 %113  ;;  %v117_v0 = vpop.xlane.xlu1 %116 }
  0xc4   :  { %125 = vxpose.xlu0.b32.cont [8/16] (narrow) %v93_v56, 8 }
  0xc8   :  { %126 = vxpose.xlu0.b32.cont [9/16] (narrow) %v96_v57, 8 }
  0xcc   :  { %127 = vxpose.xlu0.b32.cont [10/16] (narrow) %v99_v58, 8 }
  0xd0   :  { %128 = vxpose.xlu0.b32.cont [11/16] (narrow) %v102_v59, 8 }
  0xd4   :  { %129 = vxpose.xlu0.b32.cont [12/16] (narrow) %v105_v60, 8 }
  0xd8   :  { %130 = vxpose.xlu0.b32.cont [13/16] (narrow) %v108_v61, 8 }
  0xdc   :  { %131 = vxpose.xlu0.b32.cont [14/16] (narrow) %v111_v62, 8 }
  0xe0   :  { %132 = vxpose.xlu0.b32.cont [15/16] (narrow) %v114_v63, 8 }
  0xe4   :  { %133 = vxpose.xlu0.b32.end [16/16] (narrow) %v117_v0, 8 }
 0x128   :  { %v134_v2 = vpop.trf.xlu0 }
 0x129   :  { %v152_v3 = vadd.f32 %v151_v1, %v134_v2 }
 0x12b   :  { %v176_v4 = vmul.f32 -1.442695, %v152_v3 }
 0x12d   :  { %181 = vpow2.f32 %v176_v4 }
 0x137   :  { %v182_v5 = vpop.eup %181 }
 0x138   :  { %v156_v6 = vadd.f32 1.0, %v182_v5 }
 0x13a   :  { %183 = vrcp.f32 %v156_v6 }
 0x144   :  { %v184_v7 = vpop.eup %183 }
 0x145   :  { %159 = vst [vmem:[#allocation6] sm:$0x1] %v184_v7 }
 0x146   :  { %218 = shalt.err (!%p215_p12)
}
 0x147   :  { %s219_s7 = scalar_lea.hbm %s306_s3, 16 }
 0x148   :  { %p220_p13 = scmp.ne.s32.totalorder %s306_s3, %s219_s7  ;;  %p223_p0 = scmp.lt.u32.totalorder %s219_s7, %s306_s3 }
 0x14a   :  { %p225_p1 = pnand %p223_p0, %p220_p13 }
 0x14c   :  { %228 = shalt.err (!%p225_p1)
}
 0x14d   :  { %169 = dma.vmem_to_hbm [thread:$0]  %s167_s30, 16, %s306_s3, [#allocation5]  }
 0x14e   :  { %231 = dma.done.wait [#allocation5], 16  }
 0x14f   :  { %232 = vsyncadd [#allocation5], 4294967280 }
 0x150   :  { %173 = vsyncpa [#allocation4], 1 }
 0x151   :  { %174 = vsyncpa [#allocation5], 1 }

</bundles_post_ra>
